<compile_context>
chip_gen: v5e
topology: v5e:2x2
jax: 0.10.0
libtpu: 0.0.40
codegen_flags: <defaults>
</compile_context>

<pallas_src>
import functools
import math

import jax
import jax.numpy as jnp
import numpy as np
from jax import lax
from jax.experimental import pallas as pl
from jax.experimental.pallas import tpu as pltpu

_LANES = 128
_STEP_INPUT_BYTES = 8 * 1024 * 1024     # combined bytes of both input blocks per grid step
_VMEM_LIMIT_BYTES = 32 * 1024 * 1024    # explicit scoped-VMEM limit (raises v5e's 16 MiB)


def _choose_tile_rows(p_dtype, m_dtype, rows, max_tile_rows=None):
    """Pick the per-step row-tile: full `rows` if it fits, else a large multiple of 8."""
    if max_tile_rows is None:
        p_b = jnp.dtype(p_dtype).itemsize
        m_b = jnp.dtype(m_dtype).itemsize
        bytes_per_row = _LANES * (p_b + m_b)
        if jnp.dtype(p_dtype) != jnp.dtype(m_dtype):
            bytes_per_row += _LANES * 4           # in-kernel cast to the promoted dtype
        max_tile_rows = _STEP_INPUT_BYTES // bytes_per_row
    if rows <= max_tile_rows:
        return rows                               # block == full dim: no (8,) alignment needed
    return max(8, (max_tile_rows // 8) * 8)


def _flatten_lane_dense(x_stack):
    """(M, ...) -> (M, rows, 128) in native dtype.  Pure reshape (zero-copy) when
    numel % 128 == 0; `rows` is NOT rounded up to any tile multiple (ragged last row-block
    is handled in-kernel)."""
    m = x_stack.shape[0]
    if not jnp.issubdtype(x_stack.dtype, jnp.floating):
        # v7x MXU has no integer path; binary masks are exact in bf16.
        x_stack = x_stack.astype(jnp.bfloat16)
    numel = math.prod(x_stack.shape[1:])
    flat = jnp.reshape(x_stack, (m, numel))
    rem = numel % _LANES
    if rem:
        # TODO(synk): lane-unaligned numel needs one pad pass (full-tensor HBM copy);
        # keep producer shapes 128-element aligned to stay zero-copy.
        flat = jnp.pad(flat, ((0, 0), (0, _LANES - rem)))
    rows = flat.shape[1] // _LANES
    return jnp.reshape(flat, (m, rows, _LANES))


def _dice_partial_kernel(p_ref, m_ref, o_ref, acc_pm, acc_p, acc_m, *,
                         rows, tile_rows, blocks_per_shard, num_shards):
    """Per (shard, model): accumulate p^T@m (128x128) and per-lane sums of p and m on the MXU.

    Output block (1, 1, 144, 128):
        rows   0:128  -> accumulated p^T @ m  (trace = intersection, taken in the epilogue)
        rows 128:136  -> ones(8,T) @ p        (all 8 rows identical; row 0 read in epilogue)
        rows 136:144  -> ones(8,T) @ m
    """
    ri = pl.program_id(2)

    @pl.when(ri == 0)
    def _init():
        acc_pm[...] = jnp.zeros_like(acc_pm)
        acc_p[...] = jnp.zeros_like(acc_p)
        acc_m[...] = jnp.zeros_like(acc_m)

    common = jnp.promote_types(p_ref.dtype, m_ref.dtype)
    ones_p = jnp.ones((8, tile_rows), dtype=p_ref.dtype)
    ones_m = jnp.ones((8, tile_rows), dtype=m_ref.dtype)

    def _dot(a, b, dims):
        prec = lax.Precision.HIGHEST if a.dtype == jnp.float32 else None
        return lax.dot_general(a, b, (dims, ((), ())),
                               precision=prec,
                               preferred_element_type=jnp.float32)

    def accumulate(p, m):
        # intersection matrix (MXU): entry (a,b) = sum_r p[r,a]*m[r,b]; diag summed later
        acc_pm[...] += _dot(p.astype(common), m.astype(common), ((0,), (0,)))
        # per-lane column sums (MXU) -- zero VPU work per element
        acc_p[...] += _dot(ones_p, p, ((1,), (0,)))
        acc_m[...] += _dot(ones_m, m, ((1,), (0,)))

    full_blocks = rows // tile_rows
    rem_rows = rows - full_blocks * tile_rows
    blocks_total = full_blocks + (1 if rem_rows else 0)

    if rem_rows == 0 and num_shards * blocks_per_shard == blocks_total:
        # Static fast path: every grid step maps to a full, in-bounds row block.
        accumulate(p_ref[0], m_ref[0])
    else:
        b = pl.program_id(0) * blocks_per_shard + ri      # global row-block index

        @pl.when(b < full_blocks)
        def _full():
            accumulate(p_ref[0], m_ref[0])

        if rem_rows:
            @pl.when(b == full_blocks)
            def _partial():
                # Mask the ragged tail rows (block padding is undefined -> zero both operands).
                valid = lax.broadcasted_iota(jnp.int32, (tile_rows, _LANES), 0) < rem_rows
                accumulate(jnp.where(valid, p_ref[0], jnp.zeros((), p_ref.dtype)),
                           jnp.where(valid, m_ref[0], jnp.zeros((), m_ref.dtype)))
        # b > full_blocks (uneven shard split): contributes nothing.

    @pl.when(ri == pl.num_programs(2) - 1)
    def _flush():
        o_ref[0, 0, 0:_LANES, :] = acc_pm[...]
        o_ref[0, 0, _LANES:_LANES + 8, :] = acc_p[...]
        o_ref[0, 0, _LANES + 8:_LANES + 16, :] = acc_m[...]


def _dice_sums_impl(p3, m3, max_tile_rows=None):
    """p3, m3: (M, rows, 128) native dtype -> (M, 3) f32 sums [inter, sum_p, sum_m]."""
    num_models, rows, lanes = p3.shape
    assert lanes == _LANES and m3.shape == (num_models, rows, _LANES)

    tile_rows = _choose_tile_rows(p3.dtype, m3.dtype, rows, max_tile_rows)
    blocks_total = pl.cdiv(rows, tile_rows)
    # With a single model, split the row range into 2 "parallel" shards so both v7x
    # TensorCores stream half of the data; otherwise the model axis provides parallelism.
    num_shards = 2 if (num_models == 1 and blocks_total >= 2) else 1
    blocks_per_shard = pl.cdiv(blocks_total, num_shards)

    kernel = functools.partial(_dice_partial_kernel, rows=rows, tile_rows=tile_rows,
                               blocks_per_shard=blocks_per_shard, num_shards=num_shards)

    def in_map(s, mi, ri):
        b = jnp.minimum(s * blocks_per_shard + ri, blocks_total - 1)  # clamp uneven shards
        return (mi, b, 0)

    partial_sums = pl.pallas_call(
        kernel,
        out_shape=jax.ShapeDtypeStruct((num_shards, num_models, 144, _LANES), jnp.float32),
        grid_spec=pltpu.PrefetchScalarGridSpec(
            num_scalar_prefetch=0,
            grid=(num_shards, num_models, blocks_per_shard),
            in_specs=[
                pl.BlockSpec((1, tile_rows, _LANES), in_map),
                pl.BlockSpec((1, tile_rows, _LANES), in_map),
            ],
            out_specs=pl.BlockSpec((1, 1, 144, _LANES), lambda s, mi, ri: (s, mi, 0, 0)),
            scratch_shapes=[
                pltpu.VMEM((_LANES, _LANES), jnp.float32),   # running p^T @ m
                pltpu.VMEM((8, _LANES), jnp.float32),        # running per-lane sum(p)
                pltpu.VMEM((8, _LANES), jnp.float32),        # running per-lane sum(m)
            ],
        ),
        compiler_params=pltpu.CompilerParams(
            dimension_semantics=("parallel", "parallel", "arbitrary"),
            vmem_limit_bytes=_VMEM_LIMIT_BYTES,
        ),
    )(p3, m3)

    # Tiny epilogue: combine shards, take the trace / row sums -> (M, 3).
    acc = jnp.sum(partial_sums, axis=0)                                     # (M, 144, 128)
    inter = jnp.sum(jnp.diagonal(acc[:, :_LANES, :], axis1=1, axis2=2), axis=-1)
    sum_p = jnp.sum(acc[:, _LANES, :], axis=-1)        # ones@p rows are identical; row 0 only
    sum_m = jnp.sum(acc[:, _LANES + 8, :], axis=-1)
    return jnp.stack([inter, sum_p, sum_m], axis=1)                         # (M, 3)


@functools.partial(jax.custom_vjp, nondiff_argnums=(0,))
def _dice_sums(max_tile_rows, p3, m3):
    return _dice_sums_impl(p3, m3, max_tile_rows)


def _dice_sums_fwd(max_tile_rows, p3, m3):
    return _dice_sums_impl(p3, m3, max_tile_rows), (p3, m3)


def _dice_sums_bwd(max_tile_rows, res, g):
    del max_tile_rows
    p3, m3 = res
    g_inter = g[:, 0][:, None, None]
    g_p = g[:, 1][:, None, None]
    g_m = g[:, 2][:, None, None]
    dp = (g_inter * m3.astype(jnp.float32) + g_p).astype(p3.dtype)
    # Pseudo-masks are labels (normally stop-gradient); the dense dm below is dead-code
    # eliminated under jit whenever the caller does not request it.
    if jnp.issubdtype(m3.dtype, jnp.floating):
        dm = (g_inter * p3.astype(jnp.float32) + g_m).astype(m3.dtype)
    else:
        dm = np.zeros(m3.shape, dtype=jax.dtypes.float0)
    return dp, dm


_dice_sums.defvjp(_dice_sums_fwd, _dice_sums_bwd)


@functools.partial(jax.jit, static_argnames=("eps", "max_tile_rows"))
def _batched_soft_dice(p_stack, m_stack, eps=1.0, max_tile_rows=None):
    """Batched soft Dice over the model axis: (model_num, ...) -> (model_num,) f32 losses."""
    p3 = _flatten_lane_dense(p_stack)
    m3 = _flatten_lane_dense(m_stack)
    sums = _dice_sums(max_tile_rows, p3, m3)
    inter, sum_p, sum_m = sums[:, 0], sums[:, 1], sums[:, 2]
    return 1.0 - (2.0 * inter + eps) / (sum_p + sum_m + eps)


def soft_dice_loss(prob_map, pseudo_mask, eps=1.0):
    """ATOMLOSS[cfg.supv_loss]() stand-in: global soft Dice loss for a single pair."""
    return _batched_soft_dice(prob_map[None], pseudo_mask[None], eps=eps)[0]


class PseudoSupLoss:
    """JAX/Pallas equivalent of the PyTorch PseudoSupLoss module (forward semantics)."""

    def __init__(self, model_num, eps=1.0):
        self.model_num = model_num
        self.eps = eps
        self.supv_loss_func = soft_dice_loss

    def __call__(self, model_out_dict, target):
        model_out_dict = {k: v for k, v in model_out_dict.items() if 'out' in k}
        supv_name_list = [k.replace('out', 'supv_loss') for k in model_out_dict.keys()]
        supv_loss_dict = dict(zip(supv_name_list, [0.0] * self.model_num))

        # NOTE: the PyTorch reference pairs prob_map i with the i-th entry of
        # target['psuedo_mask_dict'] by insertion order; we keep that contract.
        pseudo_masks = list(target['psuedo_mask_dict'].values())
        prob_maps = [out['prob_map'] for out in model_out_dict.values()]

        # Single batched pallas_call over all models (one launch instead of model_num).
        p_stack = jnp.stack(prob_maps, axis=0)
        m_stack = jnp.stack(pseudo_masks[: len(prob_maps)], axis=0)
        parts = _batched_soft_dice(p_stack, m_stack, eps=self.eps)  # (model_num,)

        supv_loss = 0.0
        for i, name in enumerate(supv_name_list):
            supv_loss_dict[name] = supv_loss_dict[name] + parts[i]
            supv_loss = supv_loss + parts[i]
        supv_loss = supv_loss / self.model_num
        total = supv_loss
        loss_dict = {'total_loss': total, 'supv_loss': supv_loss}
        loss_dict.update(supv_loss_dict)
        return loss_dict


def _reference_dice(prob_map, pseudo_mask, eps=1.0):
    p = prob_map.astype(jnp.float32)
    m = pseudo_mask.astype(jnp.float32)
    inter = jnp.sum(p * m)
    return 1.0 - (2.0 * inter + eps) / (jnp.sum(p) + jnp.sum(m) + eps)


if __name__ == "__main__":
    key = jax.random.PRNGKey(0)
    # numel per model = 2*4*16*32 = 4096 = 32 lane-rows -> zero-copy lane-dense reshape
    N, C, H, W = 2, 4, 16, 32
    k0, k1, k2, k3, k4, k5 = jax.random.split(key, 6)

    prob_0 = jax.nn.sigmoid(jax.random.normal(k0, (N, C, H, W), jnp.float32)).astype(jnp.bfloat16)
    prob_1 = jax.nn.sigmoid(jax.random.normal(k1, (N, C, H, W), jnp.float32)).astype(jnp.bfloat16)
    # binary pseudo-masks carried as bf16 (exact for 0/1; ~33% less HBM traffic than f32)
    mask_0 = (jax.random.uniform(k2, (N, C, H, W)) > 0.5).astype(jnp.bfloat16)
    mask_1 = (jax.random.uniform(k3, (N, C, H, W)) > 0.5).astype(jnp.bfloat16)

    model_out_dict = {
        'model_0_out': {'prob_map': prob_0},
        'model_1_out': {'prob_map': prob_1},
    }
    target = {'psuedo_mask_dict': {'mask_0': mask_0, 'mask_1': mask_1}}

    loss_fn = PseudoSupLoss(model_num=2)
    loss_dict = loss_fn(model_out_dict, target)
    loss_dict = jax.tree_util.tree_map(jax.block_until_ready, loss_dict)

    # correctness check against a pure-JAX reference
    ref_0 = _reference_dice(prob_0, mask_0)
    ref_1 = _reference_dice(prob_1, mask_1)
    ref_total = (ref_0 + ref_1) / 2.0
    assert jnp.allclose(loss_dict['model_0_supv_loss'], ref_0, atol=1e-5)
    assert jnp.allclose(loss_dict['model_1_supv_loss'], ref_1, atol=1e-5)
    assert jnp.allclose(loss_dict['total_loss'], ref_total, atol=1e-5)
    assert jnp.allclose(loss_dict['supv_loss'], ref_total, atol=1e-5)

    # exercise the ragged-last-block + two-row-shard (megacore) path with a forced small tile
    p_odd = jax.random.uniform(k4, (3, 33, 128), jnp.float32)
    m_odd = (jax.random.uniform(k5, (3, 33, 128)) > 0.5).astype(jnp.float32)
    got_odd = jax.block_until_ready(
        _batched_soft_dice(p_odd[None], m_odd[None], eps=1.0, max_tile_rows=16)[0])
    assert jnp.allclose(got_odd, _reference_dice(p_odd, m_odd), atol=1e-5)

    # gradient smoke test (custom_vjp closed-form backward makes the loss trainable)
    g = jax.grad(lambda p: soft_dice_loss(p, mask_0))(prob_0.astype(jnp.float32))
    g = jax.block_until_ready(g)
    assert g.shape == prob_0.shape and bool(jnp.all(jnp.isfinite(g)))

    print("KERNEL_OK")
</pallas_src>

<mosaic_0001>
module attributes {stable_mosaic.version = 11 : i64} {
  func.func @_dice_partial_kernel(%arg0: i32, %arg1: i32, %arg2: i32, %arg3: memref<1x32x128xbf16, #tpu.memory_space<vmem>>, %arg4: memref<1x32x128xbf16, #tpu.memory_space<vmem>>, %arg5: memref<1x1x144x128xf32, #tpu.memory_space<vmem>>, %arg6: memref<128x128xf32, #tpu.memory_space<vmem>>, %arg7: memref<8x128xf32, #tpu.memory_space<vmem>>, %arg8: memref<8x128xf32, #tpu.memory_space<vmem>>) attributes {dimension_semantics = [#tpu.dimension_semantics<parallel>, #tpu.dimension_semantics<parallel>, #tpu.dimension_semantics<arbitrary>], iteration_bounds = array<i64: 1, 2, 1>, scalar_prefetch = 0 : i64, scratch_operands = 3 : i64, tpu.core_type = #tpu.core_type<tc>, window_params = [{transform_indices = @transform_0, window_bounds = array<i64: 1, 32, 128>}, {transform_indices = @transform_1, window_bounds = array<i64: 1, 32, 128>}, {transform_indices = @transform_2, window_bounds = array<i64: 1, 1, 144, 128>}]} {
    %c0_i32 = arith.constant 0 : i32
    %0 = arith.cmpi eq, %arg2, %c0_i32 : i32
    %1 = arith.extui %0 : i1 to i32
    %c0_i32_0 = arith.constant 0 : i32
    %2 = arith.cmpi ne, %1, %c0_i32_0 : i32
    scf.if %2 {
      %cst_24 = arith.constant 0.000000e+00 : f32
      %24 = vector.broadcast %cst_24 : f32 to vector<128x128xf32>
      %c0_25 = arith.constant 0 : index
      %c0_26 = arith.constant 0 : index
      %25 = vector.load %arg6[%c0_25, %c0_26] : memref<128x128xf32, #tpu.memory_space<vmem>>, vector<128x128xf32>
      tpu.vector_store %arg6[%c0_25, %c0_26], %24 {strides = array<i32>} : memref<128x128xf32, #tpu.memory_space<vmem>>, vector<128x128xf32>,
      %cst_27 = arith.constant 0.000000e+00 : f32
      %26 = vector.broadcast %cst_27 : f32 to vector<8x128xf32>
      %c0_28 = arith.constant 0 : index
      %c0_29 = arith.constant 0 : index
      %27 = vector.load %arg7[%c0_28, %c0_29] : memref<8x128xf32, #tpu.memory_space<vmem>>, vector<8x128xf32>
      tpu.vector_store %arg7[%c0_28, %c0_29], %26 {strides = array<i32>} : memref<8x128xf32, #tpu.memory_space<vmem>>, vector<8x128xf32>,
      %cst_30 = arith.constant 0.000000e+00 : f32
      %28 = vector.broadcast %cst_30 : f32 to vector<8x128xf32>
      %c0_31 = arith.constant 0 : index
      %c0_32 = arith.constant 0 : index
      %29 = vector.load %arg8[%c0_31, %c0_32] : memref<8x128xf32, #tpu.memory_space<vmem>>, vector<8x128xf32>
      tpu.vector_store %arg8[%c0_31, %c0_32], %28 {strides = array<i32>} : memref<8x128xf32, #tpu.memory_space<vmem>>, vector<8x128xf32>,
    } else {
    }
    %cst = arith.constant 1.000000e+00 : bf16
    %3 = vector.broadcast %cst : bf16 to vector<8x32xbf16>
    %cst_1 = arith.constant 1.000000e+00 : bf16
    %4 = vector.broadcast %cst_1 : bf16 to vector<8x32xbf16>
    %c0 = arith.constant 0 : index
    %c0_2 = arith.constant 0 : index
    %c0_3 = arith.constant 0 : index
    %5 = vector.load %arg3[%c0, %c0_2, %c0_3] : memref<1x32x128xbf16, #tpu.memory_space<vmem>>, vector<1x32x128xbf16>
    %6 = vector.shape_cast %5 : vector<1x32x128xbf16> to vector<32x128xbf16>
    %c0_4 = arith.constant 0 : index
    %c0_5 = arith.constant 0 : index
    %c0_6 = arith.constant 0 : index
    %7 = vector.load %arg4[%c0_4, %c0_5, %c0_6] : memref<1x32x128xbf16, #tpu.memory_space<vmem>>, vector<1x32x128xbf16>
    %8 = vector.shape_cast %7 : vector<1x32x128xbf16> to vector<32x128xbf16>
    %c0_7 = arith.constant 0 : index
    %c0_8 = arith.constant 0 : index
    %9 = vector.load %arg6[%c0_7, %c0_8] : memref<128x128xf32, #tpu.memory_space<vmem>>, vector<128x128xf32>
    %cst_9 = arith.constant dense<0.000000e+00> : vector<128x128xf32>
    %10 = tpu.matmul %6, %8, %cst_9 {dimension_numbers = #tpu.dot_dimension_numbers<[0], [0], [1], [1], [0, 1, 1, 1], [], []>} : vector<32x128xbf16>, vector<32x128xbf16>, vector<128x128xf32> -> vector<128x128xf32>
    %11 = arith.addf %9, %10 : vector<128x128xf32>
    %c0_10 = arith.constant 0 : index
    %c0_11 = arith.constant 0 : index
    %12 = vector.load %arg6[%c0_10, %c0_11] : memref<128x128xf32, #tpu.memory_space<vmem>>, vector<128x128xf32>
    tpu.vector_store %arg6[%c0_10, %c0_11], %11 {strides = array<i32>} : memref<128x128xf32, #tpu.memory_space<vmem>>, vector<128x128xf32>,
    %c0_12 = arith.constant 0 : index
    %c0_13 = arith.constant 0 : index
    %13 = vector.load %arg7[%c0_12, %c0_13] : memref<8x128xf32, #tpu.memory_space<vmem>>, vector<8x128xf32>
    %cst_14 = arith.constant dense<0.000000e+00> : vector<8x128xf32>
    %14 = tpu.matmul %3, %6, %cst_14 {dimension_numbers = #tpu.dot_dimension_numbers<[1], [0], [0], [1], [0, 0, 1, 1], [], []>} : vector<8x32xbf16>, vector<32x128xbf16>, vector<8x128xf32> -> vector<8x128xf32>
    %15 = arith.addf %13, %14 : vector<8x128xf32>
    %c0_15 = arith.constant 0 : index
    %c0_16 = arith.constant 0 : index
    %16 = vector.load %arg7[%c0_15, %c0_16] : memref<8x128xf32, #tpu.memory_space<vmem>>, vector<8x128xf32>
    tpu.vector_store %arg7[%c0_15, %c0_16], %15 {strides = array<i32>} : memref<8x128xf32, #tpu.memory_space<vmem>>, vector<8x128xf32>,
    %c0_17 = arith.constant 0 : index
    %c0_18 = arith.constant 0 : index
    %17 = vector.load %arg8[%c0_17, %c0_18] : memref<8x128xf32, #tpu.memory_space<vmem>>, vector<8x128xf32>
    %cst_19 = arith.constant dense<0.000000e+00> : vector<8x128xf32>
    %18 = tpu.matmul %4, %8, %cst_19 {dimension_numbers = #tpu.dot_dimension_numbers<[1], [0], [0], [1], [0, 0, 1, 1], [], []>} : vector<8x32xbf16>, vector<32x128xbf16>, vector<8x128xf32> -> vector<8x128xf32>
    %19 = arith.addf %17, %18 : vector<8x128xf32>
    %c0_20 = arith.constant 0 : index
    %c0_21 = arith.constant 0 : index
    %20 = vector.load %arg8[%c0_20, %c0_21] : memref<8x128xf32, #tpu.memory_space<vmem>>, vector<8x128xf32>
    tpu.vector_store %arg8[%c0_20, %c0_21], %19 {strides = array<i32>} : memref<8x128xf32, #tpu.memory_space<vmem>>, vector<8x128xf32>,
    %c0_i32_22 = arith.constant 0 : i32
    %21 = arith.cmpi eq, %arg2, %c0_i32_22 : i32
    %22 = arith.extui %21 : i1 to i32
    %c0_i32_23 = arith.constant 0 : i32
    %23 = arith.cmpi ne, %22, %c0_i32_23 : i32
    scf.if %23 {
      %c0_24 = arith.constant 0 : index
      %c0_25 = arith.constant 0 : index
      %24 = vector.load %arg6[%c0_24, %c0_25] : memref<128x128xf32, #tpu.memory_space<vmem>>, vector<128x128xf32>
      %c0_26 = arith.constant 0 : index
      %c0_27 = arith.constant 0 : index
      %c0_28 = arith.constant 0 : index
      %c0_29 = arith.constant 0 : index
      %25 = vector.load %arg5[%c0_26, %c0_27, %c0_28, %c0_29] : memref<1x1x144x128xf32, #tpu.memory_space<vmem>>, vector<1x1x128x128xf32>
      %26 = vector.shape_cast %25 : vector<1x1x128x128xf32> to vector<128x128xf32>
      %27 = vector.shape_cast %24 : vector<128x128xf32> to vector<1x1x128x128xf32>
      tpu.vector_store %arg5[%c0_26, %c0_27, %c0_28, %c0_29], %27 {strides = array<i32>} : memref<1x1x144x128xf32, #tpu.memory_space<vmem>>, vector<1x1x128x128xf32>,
      %c0_30 = arith.constant 0 : index
      %c0_31 = arith.constant 0 : index
      %28 = vector.load %arg7[%c0_30, %c0_31] : memref<8x128xf32, #tpu.memory_space<vmem>>, vector<8x128xf32>
      %c0_32 = arith.constant 0 : index
      %c0_33 = arith.constant 0 : index
      %c128 = arith.constant 128 : index
      %c0_34 = arith.constant 0 : index
      %29 = vector.load %arg5[%c0_32, %c0_33, %c128, %c0_34] : memref<1x1x144x128xf32, #tpu.memory_space<vmem>>, vector<1x1x8x128xf32>
      %30 = vector.shape_cast %29 : vector<1x1x8x128xf32> to vector<8x128xf32>
      %31 = vector.shape_cast %28 : vector<8x128xf32> to vector<1x1x8x128xf32>
      tpu.vector_store %arg5[%c0_32, %c0_33, %c128, %c0_34], %31 {strides = array<i32>} : memref<1x1x144x128xf32, #tpu.memory_space<vmem>>, vector<1x1x8x128xf32>,
      %c0_35 = arith.constant 0 : index
      %c0_36 = arith.constant 0 : index
      %32 = vector.load %arg8[%c0_35, %c0_36] : memref<8x128xf32, #tpu.memory_space<vmem>>, vector<8x128xf32>
      %c0_37 = arith.constant 0 : index
      %c0_38 = arith.constant 0 : index
      %c136 = arith.constant 136 : index
      %c0_39 = arith.constant 0 : index
      %33 = vector.load %arg5[%c0_37, %c0_38, %c136, %c0_39] : memref<1x1x144x128xf32, #tpu.memory_space<vmem>>, vector<1x1x8x128xf32>
      %34 = vector.shape_cast %33 : vector<1x1x8x128xf32> to vector<8x128xf32>
      %35 = vector.shape_cast %32 : vector<8x128xf32> to vector<1x1x8x128xf32>
      tpu.vector_store %arg5[%c0_37, %c0_38, %c136, %c0_39], %35 {strides = array<i32>} : memref<1x1x144x128xf32, #tpu.memory_space<vmem>>, vector<1x1x8x128xf32>,
    } else {
    }
    return
  }
  func.func @transform_0(%arg0: i32, %arg1: i32, %arg2: i32) -> (i32, i32, i32) {
    %c1_i32 = arith.constant 1 : i32
    %0 = arith.muli %arg0, %c1_i32 : i32
    %1 = arith.addi %0, %arg2 : i32
    %c0_i32 = arith.constant 0 : i32
    %2 = arith.minsi %1, %c0_i32 : i32
    %c0_i32_0 = arith.constant 0 : i32
    %c0_i32_1 = arith.constant 0 : i32
    return %arg1, %2, %c0_i32_0 : i32, i32, i32
  }
  func.func @transform_1(%arg0: i32, %arg1: i32, %arg2: i32) -> (i32, i32, i32) {
    %c1_i32 = arith.constant 1 : i32
    %0 = arith.muli %arg0, %c1_i32 : i32
    %1 = arith.addi %0, %arg2 : i32
    %c0_i32 = arith.constant 0 : i32
    %2 = arith.minsi %1, %c0_i32 : i32
    %c0_i32_0 = arith.constant 0 : i32
    %c0_i32_1 = arith.constant 0 : i32
    return %arg1, %2, %c0_i32_0 : i32, i32, i32
  }
  func.func @transform_2(%arg0: i32, %arg1: i32, %arg2: i32) -> (i32, i32, i32, i32) {
    %c0_i32 = arith.constant 0 : i32
    %c0_i32_0 = arith.constant 0 : i32
    %c0_i32_1 = arith.constant 0 : i32
    return %arg0, %arg1, %c0_i32, %c0_i32_0 : i32, i32, i32, i32
  }
}

</mosaic_0001>

<bundles_post_ra>
// kernel: _batched_soft_dice.1
= control target key start
LH: loop header
LB: loop body
LE: loop exit
PB: predicated region body
PF: predicated region fallthrough
CT: control target
= control target key end

     0   :  { %s760_s9 = smov 0   ;;  %s762_s10 = smov 0   ;;  %s830_s0 = inlined_call_operand.vmem [shape: bf16[2,32,128], index: 0, kind: input, shape index: {}]   ;;  %s831_s1 = inlined_call_operand.vmem [shape: bf16[2,32,128], index: 1, kind: input, shape index: {}]   ;;  %s832_s2 = inlined_call_operand.vmem [shape: f32[1,2,144,128], index: 2, kind: output, shape index: {}]  }
   0x1   :  { %s764_s11 = smov 0  }
   0x2 LB: > { %s27_s12 = sadd.s32 1, %s738_s10  ;;  %p649_p0 = scmp.ge.s32.totalorder %s742_s11, 1  ;;  %s742_s11 = sphi %s764_s11, %s12_s11   ;;  %s738_s10 = sphi %s762_s10, %s834_s10   ;;  %s734_s9 = sphi %s760_s9, %s833_s9  }
   0x3   : > { %p29_p1 = scmp.ge.s32.totalorder %s27_s12, 2  ;;  %p181_p2 = scmp.lt.s32.totalorder %s742_s11, 3 }
   0x5   : > { %s836_s12 = smov (%p29_p1, %s27_s12), 0  ;;  %p182_p3 = pnand %p649_p0, %p181_p2 }
   0x6   : > { %p230_p4 = scmp.lt.s32.totalorder (!%p182_p3), %s734_s9, 1 }
   0x7   : > { %185 = sbr.rel (%p182_p3) target bundleno = 442 (0x1ba), region = 28 }
   0xc   : > { %s838_s9 = smov (!%p230_p4, %s734_s9), 1  ;;  %vm355_vm0 = vcmask 261120   ;;  %v744_v9 = vmov 1065369472  }
   0xd   : > { %s683_s13 = sshll.u32 %s838_s9, 4  ;;  %s693_s20 = smul.u32 144, %s838_s9 }
   0xe   : > { %s237_s16 = scalar_lea.vmem %s830_s0, %s683_s13  ;;  %s253_s19 = scalar_lea.vmem %s831_s1, %s683_s13 }
   0xf   : > { %v685_v0 = vld [vmem:[%s237_s16] sm:$0xff]  ;;  %v688_v1 = vld [vmem:[%s253_s19 + $0x8] sm:$0xff]  ;;  %s801_s23 = scalar_lea.vmem %s832_s2, %s693_s20 }
  0x10   : > { %327 = vxpose.xlu0.c.b16.start [1/2] (short) %v685_v0, 128  ;;  %386 = vmatpush.bf16.msra.mxu0 %v688_v1  ;;  %v687_v2 = vld [vmem:[%s253_s19] sm:$0xff]  ;;  %v686_v3 = vld [vmem:[%s237_s16 + $0x8] sm:$0xff] }
  0x11   : > { %689 = vmatpush.bf16.msra.mxu1 %v688_v1  ;;  %690 = vmatpush.bf16.msra.mxu3 %v688_v1 }
  0x12   : > { %487 = vmatpush.bf16.msra.mxu2 %v688_v1 }
  0x14   : > { %387 = vmatpush.bf16.msra.mxu0 %v687_v2 }
  0x15   : > { %691 = vmatpush.bf16.msra.mxu1 %v687_v2  ;;  %692 = vmatpush.bf16.msra.mxu3 %v687_v2 }
  0x16   : > { %488 = vmatpush.bf16.msra.mxu2 %v687_v2 }
  0x19   : > { %471 = vmatpush.bf16.msrb.mxu1 %v686_v3  ;;  %680 = vmatmul.msk.bf16.vlgmr.msra.gmra.mxu2 %vm355_vm0, %v744_v9 }
  0x1d   : > { %472 = vmatpush.bf16.msrb.mxu1 %v685_v0 }
  0x20   : > { %328 = vxpose.xlu0.c.b16.end [2/2] (short) %v686_v3, 128 }
  0x9c   : > { %v490_v23 = vpop.f32.mrf.mxu2 }
  0x9d   : > { %534 = vst [vmem:[%s801_s23 + $0x88] sm:$0xff] %v490_v23 }
  0xa4   : > { %v492_v26 = vpop.f32.mrf.mxu2 }
  0xbc   : > { %v335_v4 = vpop.trf.xlu0 }
  0xbd   : > { %671 = vmatmul.msk.bf16.vlgmr.msra.gmra.mxu0 %vm355_vm0, %v335_v4 }
  0xcc   : > { %v336_v5 = vpop.trf.xlu0 }
  0xcd   : > { %672 = vmatmul.msk.bf16.gmra.mxu0 %vm355_vm0, %v336_v5 }
  0xdc   : > { %v337_v6 = vpop.trf.xlu0 }
  0xdd   : > { %673 = vmatmul.msk.bf16.gmra.mxu0 %vm355_vm0, %v337_v6 }
  0xec   : > { %v338_v7 = vpop.trf.xlu0 }
  0xed   : > { %674 = vmatmul.msk.bf16.vlgmr.msra.gmra.mxu1 %vm355_vm0, %v338_v7 }
  0xfc   : > { %v339_v8 = vpop.trf.xlu0 }
  0xfd   : > { %675 = vmatmul.msk.bf16.gmra.mxu1 %vm355_vm0, %v339_v8 }
 0x10c   : > { %v340_v10 = vpop.trf.xlu0 }
 0x10d   : > { %676 = vmatmul.msk.bf16.vlgmr.msra.gmra.mxu3 %vm355_vm0, %v340_v10  ;;  %679 = vmatmul.msk.bf16.vlgmr.msrb.gmra.mxu1 %vm355_vm0, %v744_v9 }
 0x11c   : > { %v341_v11 = vpop.trf.xlu0 }
 0x11d   : > { %677 = vmatmul.msk.bf16.gmra.mxu3 %vm355_vm0, %v341_v11 }
 0x12c   : > { %v342_v12 = vpop.trf.xlu0 }
 0x12d   : > { %678 = vmatmul.msk.bf16.gmra.mxu3 %vm355_vm0, %v342_v12 }
 0x13a   : > { %v389_v13 = vpop.f32.mrf.mxu0 }
 0x13b   : > { %515 = vst [vmem:[%s801_s23] sm:$0xff] %v389_v13 }
 0x142   : > { %v391_v14 = vpop.f32.mrf.mxu0 }
 0x143   : > { %516 = vst [vmem:[%s801_s23 + $0x8] sm:$0xff] %v391_v14 }
 0x14a   : > { %v394_v15 = vpop.f32.mrf.mxu0 }
 0x14b   : > { %517 = vst [vmem:[%s801_s23 + $0x10] sm:$0xff] %v394_v15 }
 0x152   : > { %v396_v16 = vpop.f32.mrf.mxu0 }
 0x153   : > { %518 = vst [vmem:[%s801_s23 + $0x18] sm:$0xff] %v396_v16 }
 0x15a   : > { %v399_v17 = vpop.f32.mrf.mxu0 }
 0x15b   : > { %519 = vst [vmem:[%s801_s23 + $0x20] sm:$0xff] %v399_v17 }
 0x162   : > { %v401_v18 = vpop.f32.mrf.mxu0 }
 0x163   : > { %520 = vst [vmem:[%s801_s23 + $0x28] sm:$0xff] %v401_v18 }
 0x16a   : > { %v404_v19 = vpop.f32.mrf.mxu1 }
 0x16b   : > { %521 = vst [vmem:[%s801_s23 + $0x30] sm:$0xff] %v404_v19 }
 0x172   : > { %v406_v20 = vpop.f32.mrf.mxu1 }
 0x173   : > { %522 = vst [vmem:[%s801_s23 + $0x38] sm:$0xff] %v406_v20 }
 0x17a   : > { %v409_v21 = vpop.f32.mrf.mxu1 }
 0x17b   : > { %523 = vst [vmem:[%s801_s23 + $0x40] sm:$0xff] %v409_v21 }
 0x182   : > { %v411_v22 = vpop.f32.mrf.mxu1 }
 0x183   : > { %524 = vst [vmem:[%s801_s23 + $0x48] sm:$0xff] %v411_v22 }
 0x18a   : > { %v474_v24 = vpop.f32.mrf.mxu1 }
 0x18b   : > { %532 = vst [vmem:[%s801_s23 + $0x80] sm:$0xff] %v474_v24 }
 0x190   : > { %v414_v25 = vpop.f32.mrf.mxu3 }
 0x191   : > { %525 = vst [vmem:[%s801_s23 + $0x50] sm:$0xff] %v414_v25 }
 0x192   : > { %v476_v27 = vpop.f32.mrf.mxu1 }
 0x198   : > { %v416_v28 = vpop.f32.mrf.mxu3 }
 0x199   : > { %526 = vst [vmem:[%s801_s23 + $0x58] sm:$0xff] %v416_v28 }
 0x1a0   : > { %v419_v29 = vpop.f32.mrf.mxu3 }
 0x1a1   : > { %527 = vst [vmem:[%s801_s23 + $0x60] sm:$0xff] %v419_v29 }
 0x1a8   : > { %v421_v30 = vpop.f32.mrf.mxu3 }
 0x1a9   : > { %528 = vst [vmem:[%s801_s23 + $0x68] sm:$0xff] %v421_v30 }
 0x1b0   : > { %v424_v31 = vpop.f32.mrf.mxu3 }
 0x1b1   : > { %529 = vst [vmem:[%s801_s23 + $0x70] sm:$0xff] %v424_v31 }
 0x1b8   : > { %v426_v32 = vpop.f32.mrf.mxu3 }
 0x1b9   : > { %530 = vst [vmem:[%s801_s23 + $0x78] sm:$0xff] %v426_v32 }
 0x1ba PF: > { %s12_s11 = sadd.s32 1, %s742_s11   ;;  %s833_s9 = smov %s738_s10 }
 0x1bb   : > { %p9_p5 = scmp.ge.s32.totalorder %s12_s11, 4   ;;  %s834_s10 = smov %s836_s12 }
 0x1bd   :  { %11 = sbr.rel (!%p9_p5) target bundleno = 2 (0x2), region = 69 }

</bundles_post_ra>
